<compile_context>
chip_gen: v7x
topology: tpu7x:2x2x1
jax: 0.10.0
libtpu: 0.0.40
codegen_flags: <defaults>
</compile_context>

<pallas_src>
import functools

import jax
import jax.numpy as jnp
from jax.experimental import pallas as pl
from jax.experimental.pallas import tpu as pltpu


def rnn_kernel(idx_ref,     # (seq_len*BPAD, 1) int32, VMEM  (padded token ids)
               tbl_ref,     # (VPAD, 2H) f32  [emb@W_ih0^T + b_ih0+b_hh0 | b1]
               w_big_ref,   # (2H, 2H) f32    [[W_hh0^T, W_ih1^T], [0, W_hh1^T]]
               w_cat1_ref,  # (2H, H)  f32    [W_ih1^T ; W_hh1^T]
               b1_ref,      # (1, H)   f32    b_ih1 + b_hh1
               fc_w_ref,    # (H, OUT_PAD) f32  (zero-padded columns)
               fc_b_ref,    # (1, OUT_PAD) f32
               out_ref,     # (BPAD, OUT_PAD) f32
               *, seq_len, bpad):
    vpad = tbl_ref.shape[0]
    h2 = w_big_ref.shape[0]
    h = h2 // 2
    n = seq_len * bpad

    # ---- prologue: one-hot matmul == (embedding gather ∘ layer-0 projection) -
    # The table's left half already holds emb @ W_ih0^T + b0 and its right
    # half holds b1 broadcast to every row, so a single (n,VPAD)@(VPAD,2H) MXU
    # push yields the whole per-timestep addend slab [xw0(t) | b1].
    # TODO(synk): for large vocab a DMA/scalar gather beats the one-hot matmul.
    iota_v = jax.lax.broadcasted_iota(jnp.int32, (n, vpad), 1)
    onehot = (iota_v == idx_ref[...]).astype(jnp.float32)
    addend = jnp.dot(onehot, tbl_ref[...],
                     preferred_element_type=jnp.float32)          # (n, 2H)

    w_big = w_big_ref[...]                                        # hoisted

    # ---- layer-skewed fused recurrence: S(t) = [h0(t) | h1(t-1)] -------------
    # init (t = 0): h0(0) = tanh(xw0(0)) (h0(-1)=0), h1(-1) = 0 (lane mask).
    lane = jax.lax.broadcasted_iota(jnp.int32, (bpad, h2), 1)
    s = jnp.where(lane < h, jnp.tanh(addend[0:bpad]), 0.0)

    # One (bpad,2H)@(2H,2H) matmul + one tanh per timestep; slab slices are
    # 8-sublane aligned.  seq_len is small (8) so full unroll is fine; switch
    # to lax.fori_loop carrying `s` for seq_len beyond ~32-64.
    for t in range(1, seq_len):
        s = jnp.tanh(jnp.dot(s, w_big, preferred_element_type=jnp.float32)
                     + addend[t * bpad:(t + 1) * bpad])

    # tail half-step: h1(L-1) = tanh([h0(L-1) | h1(L-2)] @ [W_ih1^T; W_hh1^T] + b1)
    h1 = jnp.tanh(jnp.dot(s, w_cat1_ref[...],
                          preferred_element_type=jnp.float32) + b1_ref[...])

    # hidden = tanh(dropout(h_n[-1])) ; dropout == identity in eval mode.
    # TODO(synk): training-mode dropout (stochastic mask) intentionally omitted.
    hid = jnp.tanh(h1)
    out_ref[...] = (jnp.dot(hid, fc_w_ref[...],
                            preferred_element_type=jnp.float32) + fc_b_ref[...])


def init_params(key, vocab_size, emb_dim, hidden_dim, out_dim, pad_idx):
    ks = jax.random.split(key, 11)
    k = 1.0 / jnp.sqrt(hidden_dim)

    def unif(kk, shape, bound):
        return jax.random.uniform(kk, shape, jnp.float32, -bound, bound)

    emb_w = jax.random.normal(ks[0], (vocab_size, emb_dim), jnp.float32)
    emb_w = emb_w.at[pad_idx].set(0.0)  # nn.Embedding padding_idx row is zero

    return {
        "emb": emb_w,
        # layer 0 (input_size = emb_dim)
        "w_ih0": unif(ks[1], (hidden_dim, emb_dim), k),
        "w_hh0": unif(ks[2], (hidden_dim, hidden_dim), k),
        "b_ih0": unif(ks[3], (hidden_dim,), k),
        "b_hh0": unif(ks[4], (hidden_dim,), k),
        # layer 1 (input_size = hidden_dim)
        "w_ih1": unif(ks[5], (hidden_dim, hidden_dim), k),
        "w_hh1": unif(ks[6], (hidden_dim, hidden_dim), k),
        "b_ih1": unif(ks[7], (hidden_dim,), k),
        "b_hh1": unif(ks[8], (hidden_dim,), k),
        # fc: hidden_dim -> out_dim
        "fc_w": unif(ks[9], (out_dim, hidden_dim), k),
        "fc_b": unif(ks[10], (out_dim,), k),
    }


def rnn_forward(text, text_lengths, params):
    # text_lengths is accepted (to match the PyTorch signature) but unused,
    # exactly as in the reference forward().
    del text_lengths

    seq_len, batch = text.shape
    vocab, _ = params["emb"].shape
    hidden = params["w_hh0"].shape[0]
    out_dim = params["fc_w"].shape[0]

    BPAD = 8                                    # sublane-align timestep slabs
    OUT_PAD = 128                               # lane-dense FC head output
    VPAD = ((vocab + 127) // 128) * 128         # lane-align the one-hot width

    hp = jax.lax.Precision.HIGHEST
    b0 = (params["b_ih0"] + params["b_hh0"]).reshape(1, hidden)
    b1 = (params["b_ih1"] + params["b_hh1"]).reshape(1, hidden)

    # Fold the layer-0 input projection (+ both layer-0 biases) into the
    # embedding table (gather∘matmul == matmul-table∘gather, exact), and
    # append b1 columns so the kernel's one-hot matmul emits [xw0 | b1] rows.
    proj = jnp.dot(params["emb"].astype(jnp.float32), params["w_ih0"].T,
                   precision=hp) + b0                              # (vocab, H)
    tbl = jnp.concatenate([proj, jnp.broadcast_to(b1, (vocab, hidden))], axis=-1)
    tbl = jnp.pad(tbl, ((0, VPAD - vocab), (0, 0)))                # (VPAD, 2H)

    # Block recurrent weight: S_new = tanh(S @ W_big + addend), S = [h0 | h1_prev].
    w_big = jnp.concatenate(
        [jnp.concatenate([params["w_hh0"].T, params["w_ih1"].T], axis=1),
         jnp.concatenate([jnp.zeros((hidden, hidden), jnp.float32),
                          params["w_hh1"].T], axis=1)],
        axis=0)                                                    # (2H, 2H)
    w_cat1 = jnp.concatenate([params["w_ih1"].T, params["w_hh1"].T], axis=0)

    # Lane-dense FC head: pad to 128 output lanes (slice outside).
    fc_w = jnp.zeros((hidden, OUT_PAD), jnp.float32).at[:, :out_dim].set(
        params["fc_w"].T)
    fc_b = jnp.zeros((1, OUT_PAD), jnp.float32).at[:, :out_dim].set(
        params["fc_b"].reshape(1, out_dim))

    # Pad batch to 8 sublanes (padded rows carry token 0 and are discarded).
    text_pad = jnp.zeros((seq_len, BPAD), jnp.int32).at[:, :batch].set(
        text.astype(jnp.int32))
    idx = text_pad.reshape(seq_len * BPAD, 1)

    kernel = functools.partial(rnn_kernel, seq_len=seq_len, bpad=BPAD)
    vmem = pl.BlockSpec(memory_space=pltpu.MemorySpace.VMEM)

    # Single core, no grid: the whole problem (~50 KB) is VMEM-resident; a
    # batch grid axis only pays off at much larger batch sizes.
    out_full = pl.pallas_call(
        kernel,
        out_shape=jax.ShapeDtypeStruct((BPAD, OUT_PAD), jnp.float32),
        in_specs=[vmem] * 7,
        out_specs=vmem,
    )(idx, tbl, w_big, w_cat1, b1, fc_w, fc_b)

    return out_full[:batch, :out_dim]


def rnn_forward_ref(text, text_lengths, params):
    """Pure-JAX reference of the same forward (for correctness checking)."""
    del text_lengths
    hp = jax.lax.Precision.HIGHEST
    emb = params["emb"][text].astype(jnp.float32)             # (seq, batch, emb)
    seq_len, batch, _ = emb.shape
    hidden = params["w_hh0"].shape[0]
    h0 = jnp.zeros((batch, hidden), jnp.float32)
    h1 = jnp.zeros((batch, hidden), jnp.float32)
    for t in range(seq_len):
        h0 = jnp.tanh(jnp.dot(emb[t], params["w_ih0"].T, precision=hp)
                      + params["b_ih0"]
                      + jnp.dot(h0, params["w_hh0"].T, precision=hp)
                      + params["b_hh0"])
        h1 = jnp.tanh(jnp.dot(h0, params["w_ih1"].T, precision=hp)
                      + params["b_ih1"]
                      + jnp.dot(h1, params["w_hh1"].T, precision=hp)
                      + params["b_hh1"])
    hid = jnp.tanh(h1)
    return jnp.dot(hid, params["fc_w"].T, precision=hp) + params["fc_b"]


if __name__ == "__main__":
    # Small, deterministic config consistent with the module's forward.
    vocab_size, emb_dim, hidden_dim, out_dim = 50, 32, 32, 1
    seq_len, batch = 8, 2
    pad_idx = 1

    key = jax.random.PRNGKey(0)
    k_params, k_text = jax.random.split(key)

    params = init_params(k_params, vocab_size, emb_dim, hidden_dim,
                         out_dim, pad_idx)

    text = jax.random.randint(k_text, (seq_len, batch), 0, vocab_size,
                              dtype=jnp.int32)
    text_lengths = jnp.full((batch,), seq_len, dtype=jnp.int32)

    out = rnn_forward(text, text_lengths, params)
    jax.block_until_ready(out)
    assert out.shape == (batch, out_dim), out.shape

    ref = rnn_forward_ref(text, text_lengths, params)
    max_err = float(jnp.max(jnp.abs(out - ref)))
    assert max_err < 2e-3, f"kernel vs reference mismatch: {max_err}"

    print("KERNEL_OK")
</pallas_src>

<mosaic_0001>
module attributes {stable_mosaic.version = 11 : i64} {
  func.func @rnn_kernel(%arg0: memref<64x1xi32, #tpu.memory_space<vmem>>, %arg1: memref<128x64xf32, #tpu.memory_space<vmem>>, %arg2: memref<64x64xf32, #tpu.memory_space<vmem>>, %arg3: memref<64x32xf32, #tpu.memory_space<vmem>>, %arg4: memref<1x32xf32, #tpu.memory_space<vmem>>, %arg5: memref<32x128xf32, #tpu.memory_space<vmem>>, %arg6: memref<1x128xf32, #tpu.memory_space<vmem>>, %arg7: memref<8x128xf32, #tpu.memory_space<vmem>>) attributes {dimension_semantics = [], scalar_prefetch = 0 : i64, scratch_operands = 0 : i64, tpu.core_type = #tpu.core_type<tc>} {
    %0 = tpu.iota {dimensions = array<i32: 1>} : vector<64x128xi32>
    %c0 = arith.constant 0 : index
    %c0_0 = arith.constant 0 : index
    %1 = vector.load %arg0[%c0, %c0_0] : memref<64x1xi32, #tpu.memory_space<vmem>>, vector<64x1xi32>
    %2 = vector.broadcast %1 : vector<64x1xi32> to vector<64x128xi32>
    %3 = arith.cmpi eq, %0, %2 : vector<64x128xi32>
    %4 = arith.extui %3 : vector<64x128xi1> to vector<64x128xi32>
    %5 = arith.sitofp %4 : vector<64x128xi32> to vector<64x128xf32>
    %c0_1 = arith.constant 0 : index
    %c0_2 = arith.constant 0 : index
    %6 = vector.load %arg1[%c0_1, %c0_2] : memref<128x64xf32, #tpu.memory_space<vmem>>, vector<128x64xf32>
    %cst = arith.constant dense<0.000000e+00> : vector<64x64xf32>
    %7 = tpu.matmul %5, %6, %cst {dimension_numbers = #tpu.dot_dimension_numbers<[1], [0], [0], [1], [0, 0, 1, 1], [], []>} : vector<64x128xf32>, vector<128x64xf32>, vector<64x64xf32> -> vector<64x64xf32>
    %c0_3 = arith.constant 0 : index
    %c0_4 = arith.constant 0 : index
    %8 = vector.load %arg2[%c0_3, %c0_4] : memref<64x64xf32, #tpu.memory_space<vmem>>, vector<64x64xf32>
    %9 = tpu.iota {dimensions = array<i32: 1>} : vector<8x64xi32>
    %c32_i32 = arith.constant 32 : i32
    %10 = vector.broadcast %c32_i32 : i32 to vector<8x64xi32>
    %11 = arith.cmpi slt, %9, %10 : vector<8x64xi32>
    %12 = vector.extract_strided_slice %7 {offsets = [0, 0], sizes = [8, 64], strides = [1, 1]} : vector<64x64xf32> to vector<8x64xf32>
    %13 = math.tanh %12 : vector<8x64xf32>
    %cst_5 = arith.constant 0.000000e+00 : f32
    %14 = vector.broadcast %cst_5 : f32 to vector<8x64xf32>
    %15 = arith.select %11, %13, %14 : vector<8x64xi1>, vector<8x64xf32>
    %cst_6 = arith.constant dense<0.000000e+00> : vector<8x64xf32>
    %16 = tpu.matmul %15, %8, %cst_6 {dimension_numbers = #tpu.dot_dimension_numbers<[1], [0], [0], [1], [0, 0, 1, 1], [], []>} : vector<8x64xf32>, vector<64x64xf32>, vector<8x64xf32> -> vector<8x64xf32>
    %17 = vector.extract_strided_slice %7 {offsets = [8, 0], sizes = [8, 64], strides = [1, 1]} : vector<64x64xf32> to vector<8x64xf32>
    %18 = arith.addf %16, %17 : vector<8x64xf32>
    %19 = math.tanh %18 : vector<8x64xf32>
    %cst_7 = arith.constant dense<0.000000e+00> : vector<8x64xf32>
    %20 = tpu.matmul %19, %8, %cst_7 {dimension_numbers = #tpu.dot_dimension_numbers<[1], [0], [0], [1], [0, 0, 1, 1], [], []>} : vector<8x64xf32>, vector<64x64xf32>, vector<8x64xf32> -> vector<8x64xf32>
    %21 = vector.extract_strided_slice %7 {offsets = [16, 0], sizes = [8, 64], strides = [1, 1]} : vector<64x64xf32> to vector<8x64xf32>
    %22 = arith.addf %20, %21 : vector<8x64xf32>
    %23 = math.tanh %22 : vector<8x64xf32>
    %cst_8 = arith.constant dense<0.000000e+00> : vector<8x64xf32>
    %24 = tpu.matmul %23, %8, %cst_8 {dimension_numbers = #tpu.dot_dimension_numbers<[1], [0], [0], [1], [0, 0, 1, 1], [], []>} : vector<8x64xf32>, vector<64x64xf32>, vector<8x64xf32> -> vector<8x64xf32>
    %25 = vector.extract_strided_slice %7 {offsets = [24, 0], sizes = [8, 64], strides = [1, 1]} : vector<64x64xf32> to vector<8x64xf32>
    %26 = arith.addf %24, %25 : vector<8x64xf32>
    %27 = math.tanh %26 : vector<8x64xf32>
    %cst_9 = arith.constant dense<0.000000e+00> : vector<8x64xf32>
    %28 = tpu.matmul %27, %8, %cst_9 {dimension_numbers = #tpu.dot_dimension_numbers<[1], [0], [0], [1], [0, 0, 1, 1], [], []>} : vector<8x64xf32>, vector<64x64xf32>, vector<8x64xf32> -> vector<8x64xf32>
    %29 = vector.extract_strided_slice %7 {offsets = [32, 0], sizes = [8, 64], strides = [1, 1]} : vector<64x64xf32> to vector<8x64xf32>
    %30 = arith.addf %28, %29 : vector<8x64xf32>
    %31 = math.tanh %30 : vector<8x64xf32>
    %cst_10 = arith.constant dense<0.000000e+00> : vector<8x64xf32>
    %32 = tpu.matmul %31, %8, %cst_10 {dimension_numbers = #tpu.dot_dimension_numbers<[1], [0], [0], [1], [0, 0, 1, 1], [], []>} : vector<8x64xf32>, vector<64x64xf32>, vector<8x64xf32> -> vector<8x64xf32>
    %33 = vector.extract_strided_slice %7 {offsets = [40, 0], sizes = [8, 64], strides = [1, 1]} : vector<64x64xf32> to vector<8x64xf32>
    %34 = arith.addf %32, %33 : vector<8x64xf32>
    %35 = math.tanh %34 : vector<8x64xf32>
    %cst_11 = arith.constant dense<0.000000e+00> : vector<8x64xf32>
    %36 = tpu.matmul %35, %8, %cst_11 {dimension_numbers = #tpu.dot_dimension_numbers<[1], [0], [0], [1], [0, 0, 1, 1], [], []>} : vector<8x64xf32>, vector<64x64xf32>, vector<8x64xf32> -> vector<8x64xf32>
    %37 = vector.extract_strided_slice %7 {offsets = [48, 0], sizes = [8, 64], strides = [1, 1]} : vector<64x64xf32> to vector<8x64xf32>
    %38 = arith.addf %36, %37 : vector<8x64xf32>
    %39 = math.tanh %38 : vector<8x64xf32>
    %cst_12 = arith.constant dense<0.000000e+00> : vector<8x64xf32>
    %40 = tpu.matmul %39, %8, %cst_12 {dimension_numbers = #tpu.dot_dimension_numbers<[1], [0], [0], [1], [0, 0, 1, 1], [], []>} : vector<8x64xf32>, vector<64x64xf32>, vector<8x64xf32> -> vector<8x64xf32>
    %41 = vector.extract_strided_slice %7 {offsets = [56, 0], sizes = [8, 64], strides = [1, 1]} : vector<64x64xf32> to vector<8x64xf32>
    %42 = arith.addf %40, %41 : vector<8x64xf32>
    %43 = math.tanh %42 : vector<8x64xf32>
    %c0_13 = arith.constant 0 : index
    %c0_14 = arith.constant 0 : index
    %44 = vector.load %arg3[%c0_13, %c0_14] : memref<64x32xf32, #tpu.memory_space<vmem>>, vector<64x32xf32>
    %cst_15 = arith.constant dense<0.000000e+00> : vector<8x32xf32>
    %45 = tpu.matmul %43, %44, %cst_15 {dimension_numbers = #tpu.dot_dimension_numbers<[1], [0], [0], [1], [0, 0, 1, 1], [], []>} : vector<8x64xf32>, vector<64x32xf32>, vector<8x32xf32> -> vector<8x32xf32>
    %c0_16 = arith.constant 0 : index
    %c0_17 = arith.constant 0 : index
    %46 = vector.load %arg4[%c0_16, %c0_17] : memref<1x32xf32, #tpu.memory_space<vmem>>, vector<1x32xf32>
    %47 = vector.broadcast %46 : vector<1x32xf32> to vector<8x32xf32>
    %48 = arith.addf %45, %47 : vector<8x32xf32>
    %49 = math.tanh %48 : vector<8x32xf32>
    %50 = math.tanh %49 : vector<8x32xf32>
    %c0_18 = arith.constant 0 : index
    %c0_19 = arith.constant 0 : index
    %51 = vector.load %arg5[%c0_18, %c0_19] : memref<32x128xf32, #tpu.memory_space<vmem>>, vector<32x128xf32>
    %cst_20 = arith.constant dense<0.000000e+00> : vector<8x128xf32>
    %52 = tpu.matmul %50, %51, %cst_20 {dimension_numbers = #tpu.dot_dimension_numbers<[1], [0], [0], [1], [0, 0, 1, 1], [], []>} : vector<8x32xf32>, vector<32x128xf32>, vector<8x128xf32> -> vector<8x128xf32>
    %c0_21 = arith.constant 0 : index
    %c0_22 = arith.constant 0 : index
    %53 = vector.load %arg6[%c0_21, %c0_22] : memref<1x128xf32, #tpu.memory_space<vmem>>, vector<1x128xf32>
    %54 = vector.broadcast %53 : vector<1x128xf32> to vector<8x128xf32>
    %55 = arith.addf %52, %54 : vector<8x128xf32>
    %c0_23 = arith.constant 0 : index
    %c0_24 = arith.constant 0 : index
    %56 = vector.load %arg7[%c0_23, %c0_24] : memref<8x128xf32, #tpu.memory_space<vmem>>, vector<8x128xf32>
    tpu.vector_store %arg7[%c0_23, %c0_24], %55 {strides = array<i32>} : memref<8x128xf32, #tpu.memory_space<vmem>>, vector<8x128xf32>,
    return
  }
}

</mosaic_0001>

<bundles_post_ra>
// kernel: tpu_custom_call.1
= control target key start
LH: loop header
LB: loop body
LE: loop exit
PB: predicated region body
PF: predicated region fallthrough
CT: control target
= control target key end

     0   :  { %v1447_v2 = vmov 0   ;;  %s1764_s0 = inlined_call_operand.vmem [shape: s32[64,1], index: 0, kind: input, shape index: {}]   ;;  %s1765_s1 = inlined_call_operand.vmem [shape: f32[128,64], index: 1, kind: input, shape index: {}]   ;;  %s1766_s2 = inlined_call_operand.vmem [shape: f32[64,64], index: 2, kind: input, shape index: {}]   ;;  %s1767_s3 = inlined_call_operand.vmem [shape: f32[64,32], index: 3, kind: input, shape index: {}]   ;;  %s1768_s4 = inlined_call_operand.vmem [shape: f32[1,32], index: 4, kind: input, shape index: {}]   ;;  %s1769_s5 = inlined_call_operand.vmem [shape: f32[32,128], index: 5, kind: input, shape index: {}]   ;;  %s1770_s6 = inlined_call_operand.vmem [shape: f32[1,128], index: 6, kind: input, shape index: {}]   ;;  %s1771_s7 = inlined_call_operand.hbm [shape: f32[8,128], index: 7, kind: output, shape index: {}]  }
   0x1   :  { %v29_v0 = vld [vmem:[%s1764_s0] sm:$0xff]  ;;  %v31_v1 = vld [vmem:[%s1764_s0 + $0x10] sm:$0xff]  ;;  %1401 = vset.pattern.permute.xlu0 %v1447_v2  ;;  %1402 = vset.pattern.permute.xlu1 %v1447_v2  ;;  %v30_v3 = vld [vmem:[%s1764_s0 + $0x8] sm:$0xff] }
   0x2   :  { %38 = vperm.xlu0 %1401, %v29_v0   ;;  %44 = vperm.xlu1 %1402, %v31_v1   ;;  %v85_v4 = vld [vmem:[%s1765_s1] sm:$0xff]  ;;  %v86_v5 = vld [vmem:[%s1765_s1 + $0x8] sm:$0xff]  ;;  %v32_v6 = vld [vmem:[%s1764_s0 + $0x18] sm:$0xff] }
   0x3   :  { %v1261_v7 = vpack.c.bf16 %v86_v5, %v85_v4  ;;  %v87_v8 = vld [vmem:[%s1765_s1 + $0x10] sm:$0xff]  ;;  %v88_v9 = vld [vmem:[%s1765_s1 + $0x18] sm:$0xff]  ;;  %v89_v11 = vld [vmem:[%s1765_s1 + $0x20] sm:$0xff] }
   0x4   :  { %v1265_v10 = vpack.c.bf16 %v88_v9, %v87_v8  ;;  %v90_v12 = vld [vmem:[%s1765_s1 + $0x28] sm:$0xff]  ;;  %v33_v13 = vld [vmem:[%s1764_s0 + $0x20] sm:$0xff] }
   0x5   :  { %1262 = vmatprep.subr.bf16.mxu0 %v1261_v7  ;;  %v34_v14 = vld [vmem:[%s1764_s0 + $0x28] sm:$0xff] }
   0x6   :  { %41 = vperm.xlu0 %1401, %v30_v3   ;;  %47 = vperm.xlu1 %1402, %v32_v6  }
   0x7   :  { %1264 = vmatpush3.bf16.msra.mxu0 %v1261_v7 }
   0x8   :  { %12 = vsyncpa [#allocation3], 0  ;;  %1266 = vmatprep.subr.bf16.mxu0 %v1265_v10  ;;  %v1269_v15 = vpack.c.bf16 %v90_v12, %v89_v11  ;;  %v91_v16 = vld [vmem:[%s1765_s1 + $0x30] sm:$0xff]  ;;  %v92_v17 = vld [vmem:[%s1765_s1 + $0x38] sm:$0xff]  ;;  %v1448_v27 = vmov 0.0|0.0   ;;  %v27_v36 = vlaneseq  ;;  %v1449_v40 = vmov 1.0  }
   0x9   :  { %v35_v18 = vld [vmem:[%s1764_s0 + $0x30] sm:$0xff]  ;;  %v1273_v19 = vpack.c.bf16 %v92_v17, %v91_v16  ;;  %v93_v20 = vld [vmem:[%s1765_s1 + $0x40] sm:$0xff]  ;;  %v94_v21 = vld [vmem:[%s1765_s1 + $0x48] sm:$0xff]  ;;  %1293 = vmatprep.subr.bf16.mxu1 %v1448_v27  ;;  %vm1450_vm7 = vmmov 0   ;;  %v1451_v52 = vmov 0.0   ;;  %vm217_vm9 = vcmask 523264  }
   0xa   :  { %50 = vperm.xlu0 %1401, %v33_v13   ;;  %53 = vperm.xlu1 %1402, %v34_v14   ;;  %v1277_v22 = vpack.c.bf16 %v94_v21, %v93_v20  ;;  %v206_v23 = vld [vmem:[%s1766_s2] sm:$0xff]  ;;  %v207_v24 = vld [vmem:[%s1766_s2 + $0x8] sm:$0xff]  ;;  %v95_v25 = vld [vmem:[%s1765_s1 + $0x50] sm:$0xff]  ;;  %v1574_v37 = vand.u32 127, %v27_v36  ;;  %vm837_vm11 = vcmask 261120  }
   0xb   :  { %1268 = vmatpush3.bf16.msra.mxu0 %v1265_v10  ;;  %v96_v26 = vld [vmem:[%s1765_s1 + $0x58] sm:$0xff]  ;;  %v1557_v28 = vpack.c.bf16 %v207_v24, %v206_v23  ;;  %v97_v30 = vld [vmem:[%s1765_s1 + $0x60] sm:$0xff]  ;;  %v98_v31 = vld [vmem:[%s1765_s1 + $0x68] sm:$0xff]  ;;  %1114 = vmatprep.mubr.msk.f32.mxu1 %vm1450_vm7, %v1451_v52 }
   0xc   :  { %1270 = vmatprep.subr.bf16.mxu0 %v1269_v15  ;;  %v1281_v29 = vpack.c.bf16 %v96_v26, %v95_v25  ;;  %v1285_v32 = vpack.c.bf16 %v98_v31, %v97_v30  ;;  %v99_v33 = vld [vmem:[%s1765_s1 + $0x70] sm:$0xff]  ;;  %v100_v34 = vld [vmem:[%s1765_s1 + $0x78] sm:$0xff]  ;;  %v210_v49 = vld [vmem:[%s1766_s2 + $0x20] sm:$0xff]  ;;  %vm214_vm8 = vcmp.lt.s32.totalorder %v1574_v37, 32 }
   0xd   :  { %1295 = vmatpush3.bf16.msra.mxu1 %v1557_v28  ;;  %v1289_v35 = vpack.c.bf16 %v100_v34, %v99_v33  ;;  %v208_v46 = vld [vmem:[%s1766_s2 + $0x10] sm:$0xff]  ;;  %v209_v47 = vld [vmem:[%s1766_s2 + $0x18] sm:$0xff]  ;;  %v211_v50 = vld [vmem:[%s1766_s2 + $0x28] sm:$0xff] }
   0xe   :  { %56 = vperm.xlu0 %1401, %v35_v18   ;;  %1296 = vmatprep.subr.bf16.mxu1 %v1448_v27  ;;  %v1598_v48 = vpack.c.bf16 %v209_v47, %v208_v46  ;;  %v1607_v51 = vpack.c.bf16 %v211_v50, %v210_v49  ;;  %v212_v53 = vld [vmem:[%s1766_s2 + $0x30] sm:$0xff]  ;;  %v213_v54 = vld [vmem:[%s1766_s2 + $0x38] sm:$0xff]  ;;  %v736_v24 = vld [vmem:[%s1767_s3] sm:$0xff] }
   0xf   :  { %1272 = vmatpush3.bf16.msra.mxu0 %v1269_v15  ;;  %v1621_v55 = vpack.c.bf16 %v213_v54, %v212_v53  ;;  %v36_v56 = vld [vmem:[%s1764_s0 + $0x38] sm:$0xff]  ;;  %v737_v25 = vld [vmem:[%s1767_s3 + $0x8] sm:$0xff]  ;;  %v828_v47 = vld [vmem:[%s1769_s5 + $0x10] sm:$0xff]  ;;  %s1452_s0 = smov [#allocation2]  }
  0x10   :  { %1274 = vmatprep.subr.bf16.mxu0 %v1273_v19  ;;  %59 = vperm.xlu1 %1402, %v36_v56   ;;  %v1378_v26 = vpack.c.bf16 %v737_v25, %v736_v24  ;;  %v739_v33 = vld [vmem:[%s1767_s3 + $0x18] sm:$0xff]  ;;  %v741_v36 = vld [vmem:[%s1767_s3 + $0x28] sm:$0xff]  ;;  %s918_s17 = sshll.u32 %s1452_s0, 4  ;;  %s919_s17 = int_to_ptr.vmem [resolvable:$true] %s918_s17 }
  0x11   :  { %1298 = vmatpush3.bf16.msra.mxu1 %v1598_v48  ;;  %v827_v46 = vld [vmem:[%s1769_s5 + $0x8] sm:$0xff]  ;;  %v829_v49 = vld [vmem:[%s1769_s5 + $0x18] sm:$0xff]  ;;  %p1428_p1 = scmp.lt.s32.totalorder %s919_s17, %s919_s17 }
  0x12   :  { %1299 = vmatprep.subr.bf16.mxu1 %v1448_v27  ;;  %v1393_v50 = vpack.c.bf16 %v829_v49, %v828_v47 }
  0x13   :  { %1276 = vmatpush3.bf16.msra.mxu0 %v1273_v19 }
  0x14   :  { %1278 = vmatprep.subr.bf16.mxu0 %v1277_v22 }
  0x15   :  { %1301 = vmatpush3.bf16.msra.mxu1 %v1607_v51 }
  0x16   :  { %1302 = vmatprep.subr.bf16.mxu1 %v1448_v27 }
  0x17   :  { %1280 = vmatpush3.bf16.msra.mxu0 %v1277_v22 }
  0x18   :  { %1282 = vmatprep.subr.bf16.mxu0 %v1281_v29 }
  0x19   :  { %1304 = vmatpush3.bf16.msra.mxu1 %v1621_v55 }
  0x1a   :  { %1305 = vmatprep.subr.bf16.mxu1 %v1448_v27 }
  0x1b   :  { %1284 = vmatpush3.bf16.msra.mxu0 %v1281_v29 }
  0x1c   :  { %1286 = vmatprep.subr.bf16.mxu0 %v1285_v32 }
  0x1f   :  { %1288 = vmatpush3.bf16.msra.mxu0 %v1285_v32  ;;  %v738_v32 = vld [vmem:[%s1767_s3 + $0x10] sm:$0xff] }
  0x20   :  { %1290 = vmatprep.subr.bf16.mxu0 %v1289_v35  ;;  %v1381_v34 = vpack.c.bf16 %v739_v33, %v738_v32 }
  0x23   :  { %1292 = vmatpush3.bf16.msra.mxu0 %v1289_v35  ;;  %v740_v35 = vld [vmem:[%s1767_s3 + $0x20] sm:$0xff] }
  0x24   :  { %1317 = vmatprep.subr.bf16.mxu0 %v1448_v27 }
  0x81   :  { %v39_v38 = vpop.permute.xlu0 %38  ;;  %v45_v39 = vpop.permute.xlu1 %44 }
  0x82   :  { %vm61_vm0 = vcmp.eq.s32.totalorder %v1574_v37, %v39_v38  ;;  %vm63_vm1 = vcmp.eq.s32.totalorder %v1574_v37, %v45_v39  ;;  %v742_v38 = vld [vmem:[%s1767_s3 + $0x30] sm:$0xff]  ;;  %v743_v39 = vld [vmem:[%s1767_s3 + $0x38] sm:$0xff] }
  0x83   :  { %1086 = vmatprep.mubr.msk.f32.mxu0 %vm61_vm0, %v1449_v40 }
  0x85   :  { %v42_v41 = vpop.permute.xlu0 %41  ;;  %v48_v42 = vpop.permute.xlu1 %47 }
  0x86   :  { %vm62_vm2 = vcmp.eq.s32.totalorder %v1574_v37, %v42_v41  ;;  %vm64_vm3 = vcmp.eq.s32.totalorder %v1574_v37, %v48_v42 }
  0x87   :  { %1087 = vmatmul.mubr.msk.f32.vlgmr.msra.gmra.mrb[0].mxu0 %vm62_vm2, %v1449_v40 }
  0x88   :  { %1089 = vmatprep.mubr.msk.f32.mxu0 %vm63_vm1, %v1449_v40  ;;  %1319 = vmatpush3.bf16.msra.mxu0 %v1557_v28 }
  0x89   :  { %v51_v43 = vpop.permute.xlu0 %50  ;;  %v54_v44 = vpop.permute.xlu1 %53  ;;  %1320 = vmatprep.subr.bf16.mxu0 %v1448_v27 }
  0x8a   :  { %vm65_vm4 = vcmp.eq.s32.totalorder %v1574_v37, %v51_v43  ;;  %vm66_vm5 = vcmp.eq.s32.totalorder %v1574_v37, %v54_v44 }
  0x8b   :  { %1090 = vmatmul.mubr.msk.f32.gmra.mrb[2].mxu0 %vm64_vm3, %v1449_v40 }
  0x8c   :  { %1092 = vmatprep.mubr.msk.f32.mxu0 %vm65_vm4, %v1449_v40  ;;  %1322 = vmatpush3.bf16.msra.mxu0 %v1598_v48 }
  0x8d   :  { %v57_v45 = vpop.permute.xlu0 %56  ;;  %1323 = vmatprep.subr.bf16.mxu0 %v1448_v27 }
  0x8e   :  { %vm67_vm6 = vcmp.eq.s32.totalorder %v1574_v37, %v57_v45  ;;  %v826_v45 = vld [vmem:[%s1769_s5] sm:$0xff] }
  0x8f   :  { %1093 = vmatmul.mubr.msk.f32.gmra.mrb[4].mxu0 %vm66_vm5, %v1449_v40  ;;  %v60_v61 = vpop.permute.xlu1 %59 }
  0x90   :  { %1095 = vmatprep.mubr.msk.f32.mxu0 %vm67_vm6, %v1449_v40  ;;  %1325 = vmatpush3.bf16.msra.mxu0 %v1607_v51  ;;  %vm68_vm10 = vcmp.eq.s32.totalorder %v1574_v37, %v60_v61  ;;  %v1384_v37 = vpack.c.bf16 %v741_v36, %v740_v35 }
  0x91   :  { %1326 = vmatprep.subr.bf16.mxu0 %v1448_v27 }
  0x93   :  { %1096 = vmatmul.mubr.msk.f32.gmra.mrb[6].mxu0 %vm68_vm10, %v1449_v40  ;;  %v1387_v40 = vpack.c.bf16 %v743_v39, %v742_v38 }
  0x94   :  { %1328 = vmatpush3.bf16.msra.mxu0 %v1621_v55  ;;  %1152 = vmatprep.mubr.msk.f32.mxu0 %vm1450_vm7, %v1451_v52 }
  0x95   :  { %1341 = vmatprep.subr.bf16.mxu0 %v1448_v27 }
 0x15a   :  { %v1088_v57 = vpop.f32.mrb[0].mxu0 }
 0x15b   :  { %v167_v58 = vpop.f32.mrb[1].mxu0 }
 0x15c   :  { %1403 = vtanh.f32 %v167_v58 }
 0x15e   :  { %v1091_v62 = vpop.f32.mrb[2].mxu0 }
 0x15f   :  { %v177_v63 = vpop.f32.mrb[3].mxu0 }
 0x162   :  { %v1649_v0 = vpop.f32.mrb[4].mxu0 }
 0x163   :  { %v187_v1 = vpop.f32.mrb[5].mxu0 }
 0x166   :  { %v1404_v59 = vpop.eup %1403  ;;  %v1662_v6 = vpop.f32.mrb[6].mxu0 }
 0x167   :  { %v216_v60 = vsel %vm214_vm8, %v1404_v59, 0.0  ;;  %v197_v7 = vpop.f32.mrb[7].mxu0 }
 0x168   :  { %1115 = vmatmul.mubr.msk.f32.vlgmr.msra.gmra.mrb[0].mxu1 %vm217_vm9, %v216_v60 }
 0x169   :  { %1307 = vmatpush3.bf16.msra.mxu1 %v1557_v28  ;;  %1133 = vmatprep.mubr.msk.f32.mxu1 %vm1450_vm7, %v1451_v52 }
 0x16a   :  { %1308 = vmatprep.subr.bf16.mxu1 %v1448_v27 }
 0x16d   :  { %1310 = vmatpush3.bf16.msra.mxu1 %v1598_v48 }
 0x16e   :  { %1311 = vmatprep.subr.bf16.mxu1 %v1448_v27 }
 0x171   :  { %1313 = vmatpush3.bf16.msra.mxu1 %v1607_v51 }
 0x172   :  { %1314 = vmatprep.subr.bf16.mxu1 %v1448_v27 }
 0x175   :  { %1316 = vmatpush3.bf16.msra.mxu1 %v1621_v55 }
 0x176   :  { %1329 = vmatprep.subr.bf16.mxu1 %v1448_v27 }
 0x23b   :  { %v287_v2 = vpop.f32.mrb[0].mxu1 }
 0x23c   :  { %v288_v3 = vadd.f32 %v1088_v57, %v287_v2  ;;  %v1116_v4 = vpop.f32.mrb[1].mxu1  ;;  %v951_v57 = vld [vmem:[%s1770_s6] ss:$0 sm:$0xff] }
 0x23e   :  { %1405 = vtanh.f32 %v288_v3 }
 0x248   :  { %v1406_v5 = vpop.eup %1405 }
 0x249   :  { %1134 = vmatmul.mubr.msk.f32.vlgmr.msra.gmra.mrb[2].mxu1 %vm217_vm9, %v1406_v5 }
 0x24a   :  { %1331 = vmatpush3.bf16.msra.mxu1 %v1557_v28  ;;  %1171 = vmatprep.mubr.msk.f32.mxu1 %vm1450_vm7, %v1451_v52 }
 0x24b   :  { %1332 = vmatprep.subr.bf16.mxu1 %v1448_v27 }
 0x24e   :  { %1334 = vmatpush3.bf16.msra.mxu1 %v1598_v48 }
 0x24f   :  { %1335 = vmatprep.subr.bf16.mxu1 %v1448_v27 }
 0x252   :  { %1337 = vmatpush3.bf16.msra.mxu1 %v1607_v51 }
 0x253   :  { %1338 = vmatprep.subr.bf16.mxu1 %v1448_v27 }
 0x256   :  { %1340 = vmatpush3.bf16.msra.mxu1 %v1621_v55 }
 0x257   :  { %1353 = vmatprep.subr.bf16.mxu1 %v1448_v27 }
 0x31c   :  { %v361_v8 = vpop.f32.mrb[2].mxu1 }
 0x31d   :  { %v362_v9 = vadd.f32 %v361_v8, %v177_v63  ;;  %v1135_v10 = vpop.f32.mrb[3].mxu1 }
 0x31f   :  { %1407 = vtanh.f32 %v362_v9 }
 0x329   :  { %v1408_v11 = vpop.eup %1407 }
 0x32a   :  { %1153 = vmatmul.mubr.msk.f32.vlgmr.msra.gmra.mrb[8].mxu0 %vm217_vm9, %v1408_v11 }
 0x32b   :  { %1343 = vmatpush3.bf16.msra.mxu0 %v1557_v28  ;;  %1190 = vmatprep.mubr.msk.f32.mxu0 %vm1450_vm7, %v1451_v52 }
 0x32c   :  { %1344 = vmatprep.subr.bf16.mxu0 %v1448_v27 }
 0x32f   :  { %1346 = vmatpush3.bf16.msra.mxu0 %v1598_v48 }
 0x330   :  { %1347 = vmatprep.subr.bf16.mxu0 %v1448_v27 }
 0x333   :  { %1349 = vmatpush3.bf16.msra.mxu0 %v1607_v51 }
 0x334   :  { %1350 = vmatprep.subr.bf16.mxu0 %v1448_v27 }
 0x337   :  { %1352 = vmatpush3.bf16.msra.mxu0 %v1621_v55 }
 0x338   :  { %1365 = vmatprep.subr.bf16.mxu0 %v1448_v27 }
 0x3fd   :  { %v435_v12 = vpop.f32.mrb[8].mxu0 }
 0x3fe   :  { %v436_v13 = vadd.f32 %v1091_v62, %v435_v12  ;;  %v1154_v14 = vpop.f32.mrb[9].mxu0 }
 0x400   :  { %1409 = vtanh.f32 %v436_v13 }
 0x40a   :  { %v1410_v15 = vpop.eup %1409 }
 0x40b   :  { %1172 = vmatmul.mubr.msk.f32.vlgmr.msra.gmra.mrb[4].mxu1 %vm217_vm9, %v1410_v15 }
 0x40c   :  { %1355 = vmatpush3.bf16.msra.mxu1 %v1557_v28  ;;  %1209 = vmatprep.mubr.msk.f32.mxu1 %vm1450_vm7, %v1451_v52 }
 0x40d   :  { %1356 = vmatprep.subr.bf16.mxu1 %v1448_v27 }
 0x410   :  { %1358 = vmatpush3.bf16.msra.mxu1 %v1598_v48 }
 0x411   :  { %1359 = vmatprep.subr.bf16.mxu1 %v1448_v27 }
 0x414   :  { %1361 = vmatpush3.bf16.msra.mxu1 %v1607_v51 }
 0x415   :  { %1362 = vmatprep.subr.bf16.mxu1 %v1448_v27 }
 0x418   :  { %1364 = vmatpush3.bf16.msra.mxu1 %v1621_v55 }
 0x419   :  { %1377 = vmatprep.subr.bf16.mxu1 %v1448_v27 }
 0x4de   :  { %v509_v16 = vpop.f32.mrb[4].mxu1 }
 0x4df   :  { %v510_v17 = vadd.f32 %v509_v16, %v187_v1  ;;  %v1173_v18 = vpop.f32.mrb[5].mxu1 }
 0x4e1   :  { %1411 = vtanh.f32 %v510_v17 }
 0x4eb   :  { %v1412_v19 = vpop.eup %1411 }
 0x4ec   :  { %1191 = vmatmul.mubr.msk.f32.vlgmr.msra.gmra.mrb[10].mxu0 %vm217_vm9, %v1412_v19 }
 0x4ed   :  { %1367 = vmatpush3.bf16.msra.mxu0 %v1557_v28  ;;  %1228 = vmatprep.mubr.msk.f32.mxu0 %vm1450_vm7, %v1451_v52 }
 0x4ee   :  { %1368 = vmatprep.subr.bf16.mxu0 %v1448_v27 }
 0x4f1   :  { %1370 = vmatpush3.bf16.msra.mxu0 %v1598_v48  ;;  %v1390_v48 = vpack.c.bf16 %v827_v46, %v826_v45 }
 0x4f2   :  { %1371 = vmatprep.subr.bf16.mxu0 %v1448_v27 }
 0x4f5   :  { %1373 = vmatpush3.bf16.msra.mxu0 %v1607_v51  ;;  %v949_v51 = vld [vmem:[%s1768_s4] ss:$0 sm:$0xff]  ;;  %s1423_s4 = scalar_lea.vmem %s919_s17, 128 }
 0x4f6   :  { %1374 = vmatprep.subr.bf16.mxu0 %v1448_v27  ;;  %p1424_p0 = scmp.ne.s32.totalorder %s919_s17, %s1423_s4  ;;  %p1429_p2 = scmp.lt.s32.totalorder %s1423_s4, %s1423_s4 }
 0x4f8   :  { %p1430_p3 = por %p1429_p2, %p1428_p1 }
 0x4f9   :  { %1376 = vmatpush3.bf16.msra.mxu0 %v1621_v55 }
 0x4fa   :  { %1389 = vmatprep.subr.bf16.mxu0 %v1448_v27  ;;  %p1431_p4 = pnand %p1430_p3, %p1424_p0 }
 0x5bf   :  { %v583_v20 = vpop.f32.mrb[10].mxu0 }
 0x5c0   :  { %v584_v21 = vadd.f32 %v1649_v0, %v583_v20  ;;  %v1192_v22 = vpop.f32.mrb[11].mxu0 }
 0x5c2   :  { %1413 = vtanh.f32 %v584_v21 }
 0x5cc   :  { %v1414_v23 = vpop.eup %1413 }
 0x5cd   :  { %1210 = vmatmul.mubr.msk.f32.vlgmr.msra.gmra.mrb[6].mxu1 %vm217_vm9, %v1414_v23 }
 0x5ce   :  { %1247 = vmatprep.mubr.msk.f32.mxu1 %vm1450_vm7, %v1451_v52  ;;  %1379 = vmatpush3.bf16.msra.mxu1 %v1378_v26 }
 0x5cf   :  { %1380 = vmatprep.subr.bf16.mxu1 %v1448_v27 }
 0x5d2   :  { %1382 = vmatpush3.bf16.msra.mxu1 %v1381_v34 }
 0x5d3   :  { %1383 = vmatprep.subr.bf16.mxu1 %v1448_v27 }
 0x5d6   :  { %1385 = vmatpush3.bf16.msra.mxu1 %v1384_v37 }
 0x5d7   :  { %1386 = vmatprep.subr.bf16.mxu1 %v1448_v27 }
 0x5da   :  { %1388 = vmatpush3.bf16.msra.mxu1 %v1387_v40 }
 0x6a0   :  { %v657_v28 = vpop.f32.mrb[6].mxu1 }
 0x6a1   :  { %v658_v29 = vadd.f32 %v657_v28, %v197_v7  ;;  %v1211_v30 = vpop.f32.mrb[7].mxu1 }
 0x6a3   :  { %1415 = vtanh.f32 %v658_v29 }
 0x6ad   :  { %v1416_v31 = vpop.eup %1415 }
 0x6ae   :  { %1229 = vmatmul.mubr.msk.f32.vlgmr.msra.gmra.mrb[12].mxu0 %vm217_vm9, %v1416_v31 }
 0x6af   :  { %1258 = vmatprep.mubr.msk.f32.mxu0 %vm1450_vm7, %v1451_v52  ;;  %1391 = vmatpush3.bf16.msra.mxu0 %v1390_v48 }
 0x6b0   :  { %1392 = vmatprep.subr.bf16.mxu0 %v1448_v27 }
 0x6b3   :  { %1394 = vmatpush3.bf16.msra.mxu0 %v1393_v50 }
 0x781   :  { %v731_v41 = vpop.f32.mrb[12].mxu0 }
 0x782   :  { %v732_v42 = vadd.f32 %v1662_v6, %v731_v41  ;;  %v1230_v43 = vpop.f32.mrb[13].mxu0 }
 0x784   :  { %1417 = vtanh.f32 %v732_v42 }
 0x78e   :  { %v1418_v44 = vpop.eup %1417 }
 0x78f   :  { %1248 = vmatmul.mubr.msk.f32.vlgmr.msra.gmra.mrb[8].mxu1 %vm217_vm9, %v1418_v44 }
 0x862   :  { %v820_v52 = vpop.f32.mrb[8].mxu1 }
 0x863   :  { %v821_v53 = vadd.f32 %v949_v51, %v820_v52  ;;  %v1249_v54 = vpop.f32.mrb[9].mxu1 }
 0x865   :  { %1419 = vtanh.f32 %v821_v53 }
 0x86f   :  { %v1420_v55 = vpop.eup %1419 }
 0x870   :  { %1421 = vtanh.f32 %v1420_v55 }
 0x87a   :  { %v1422_v56 = vpop.eup %1421 }
 0x87b   :  { %1259 = vmatmul.mubr.msk.f32.vlgmr.msra.gmra.mrb[14].mxu0 %vm837_vm11, %v1422_v56 }
 0x94e   :  { %v907_v27 = vpop.f32.mrb[14].mxu0 }
 0x94f   :  { %v908_v58 = vadd.f32 %v951_v57, %v907_v27  ;;  %v1260_v59 = vpop.f32.mrb[15].mxu0 }
 0x951   :  { %911 = vst [vmem:[#allocation2] sm:$0xff] %v908_v58 }
 0x952   :  { %1434 = shalt.err (!%p1431_p4)
}
 0x953   :  { %s1435_s20 = scalar_lea.hbm %s1771_s7, 128 }
 0x954   :  { %p1436_p5 = scmp.ne.s32.totalorder %s1771_s7, %s1435_s20  ;;  %p1439_p6 = scmp.lt.u32.totalorder %s1435_s20, %s1771_s7 }
 0x956   :  { %p1441_p7 = pnand %p1439_p6, %p1436_p5 }
 0x958   :  { %1444 = shalt.err (!%p1441_p7)
}
 0x959   :  { %921 = dma.vmem_to_hbm [thread:$0]  %s919_s17, 128, %s1771_s7, [#allocation3]  }
 0x95a   :  { %1445 = dma.done.wait [#allocation3], 128  }
 0x95b   :  { %1446 = vsyncadd [#allocation3], 4294967168 }
 0x95c   :  { %925 = vsyncpa [#allocation3], 1 }

</bundles_post_ra>
